<compile_context>
chip_gen: v7x
topology: tpu7x:2x2x1
jax: 0.10.0
libtpu: 0.0.40
codegen_flags: <defaults>
</compile_context>

<pallas_src>
import functools
import math

import jax
import jax.numpy as jnp
from jax import lax
from jax.experimental import pallas as pl
from jax.experimental.pallas import tpu as pltpu


# ----------------------------- Kernel A ------------------------------------
# Per batch-block: mean over T, pairwise "negative squared distance" matrix
# (lane-dense flattened), and the time-averaged features in (V, C) layout.
def _make_pairwise_kernel(nb, C, T, V):
    def kernel(x_ref, pd_ref, xm_ref):
        x = x_ref[...]                                   # (nb, C, T, V)
        xm_cv = jnp.mean(x, axis=2)                      # (nb, C, V)
        xm_vc = jnp.transpose(xm_cv, (0, 2, 1))          # (nb, V, C)
        # inner[n, i, j] = sum_c xm[n, i, c] * xm[n, j, c]   (batched MXU matmul)
        inner = jnp.einsum('nvc,nwc->nvw', xm_vc, xm_vc,
                           preferred_element_type=jnp.float32)    # (nb, V, V)
        sq = jnp.sum(xm_vc * xm_vc, axis=2)              # (nb, V)
        # pd[i, j] = -||x_i||^2 + 2 x_i.x_j - ||x_j||^2
        pd = 2.0 * inner - sq[:, :, None] - sq[:, None, :]
        pd_ref[...] = pd.reshape(nb, 1, V * V)           # lane-dense store
        xm_ref[...] = xm_vc
    return kernel


# ----------------------------- Kernel B ------------------------------------
# Per batch-block: BN-folded 1x1 conv (split-W identity), one-hot neighbor
# gather as a matmul, K-way max, bias + LeakyReLU, lane-dense flattened store.
def _make_edgeconv_kernel(nb, C, V, K, O):
    def kernel(xm_ref, sel_ref, w1_ref, wd_ref, bias_ref, out_ref):
        xm = xm_ref[...]                                 # (nb, V, C)
        sel = sel_ref[...]                               # (nb, K*V, V) one-hot
        w1 = w1_ref[...]                                 # (O, C)  BN-scale folded
        wd = wd_ref[...]                                 # (O, C)  BN-scale folded
        bias = bias_ref[...]                             # (1, O)

        # Per-vertex matmuls (batch flattened into the M dimension).
        xm2 = xm.reshape(nb * V, C)
        nbr = lax.dot_general(xm2, w1, (((1,), (1,)), ((), ())),
                              preferred_element_type=jnp.float32)   # (nb*V, O)
        slf = lax.dot_general(xm2, wd, (((1,), (1,)), ((), ())),
                              preferred_element_type=jnp.float32)   # (nb*V, O)
        nbr = nbr.reshape(nb, V, O)

        # Neighbor gather as one-hot selection matmul (K-major row layout so
        # the k-reduction below is static contiguous slices).
        gathered = jnp.einsum('nsv,nvo->nso', sel, nbr,
                              preferred_element_type=jnp.float32)   # (nb, K*V, O)

        g = gathered[:, 0:V, :]
        for kk in range(1, K):                           # unrolled K-way max
            g = jnp.maximum(g, gathered[:, kk * V:(kk + 1) * V, :])

        y = g + slf.reshape(nb, V, O) + bias             # self term + BN bias
        y = jnp.where(y > 0, y, 0.2 * y)                 # LeakyReLU(0.2)
        out_ref[...] = y.reshape(nb, 1, V * O)           # lane-dense store
    return kernel


# ----------------------------- Wrapper --------------------------------------
def edge_conv_forward(x, conv_w, bn_scale, bn_bias, k):
    """x: (N, C, T, V) f32; conv_w: (O, 2C) f32; bn_scale/bn_bias: (1, O) f32."""
    N, C, T, V = x.shape
    O = conv_w.shape[0]

    # Batch block size: keep >=2 parallel grid steps when N allows (both v7x
    # TensorCores busy); otherwise a single step over the whole batch.
    if N >= 2 and N % 2 == 0:
        nb = N // 2
    else:
        nb = N
    grid = (N // nb,)
    cparams = pltpu.CompilerParams(
        dimension_semantics=("parallel",),
        vmem_limit_bytes=32 * 1024 * 1024)

    # --- Kernel A: mean over T + pairwise-distance (lane-dense) -------------
    pd_flat, xm_vc = pl.pallas_call(
        _make_pairwise_kernel(nb, C, T, V),
        grid=grid,
        in_specs=[pl.BlockSpec((nb, C, T, V), lambda b: (b, 0, 0, 0))],
        out_specs=[
            pl.BlockSpec((nb, 1, V * V), lambda b: (b, 0, 0)),
            pl.BlockSpec((nb, V, C), lambda b: (b, 0, 0)),
        ],
        out_shape=(
            jax.ShapeDtypeStruct((N, 1, V * V), jnp.float32),
            jax.ShapeDtypeStruct((N, V, C), jnp.float32),
        ),
        compiler_params=cparams,
    )(x)

    # --- k-NN top-k: data-dependent selection, kept in plain JAX ------------
    # TODO(synk): top_k has no clean Pallas equivalent; done with lax.top_k.
    pd = pd_flat.reshape(N, V, V)
    idx = lax.top_k(pd, k)[1]                            # (N, V, k) int32
    # One-hot neighbor-selection matrix, K-major rows:
    #   sel[n, kk*V + v, j] = 1  iff  idx[n, v, kk] == j
    sel = jax.nn.one_hot(jnp.transpose(idx, (0, 2, 1)).reshape(N, k * V),
                         V, dtype=jnp.float32)           # (N, k*V, V)

    # Fold eval-mode BN scale into the conv weights; split W so the 2C concat
    # disappears:  concat(f - x, x) @ W^T == f @ W1^T + x @ (W2 - W1)^T.
    scale = bn_scale.reshape(O, 1)
    w1 = conv_w[:, :C] * scale                           # (O, C)
    wd = (conv_w[:, C:] - conv_w[:, :C]) * scale         # (O, C)
    bias = bn_bias.reshape(1, O)

    # --- Kernel B: conv + BN + gather + max over k + LeakyReLU ---------------
    out_flat = pl.pallas_call(
        _make_edgeconv_kernel(nb, C, V, k, O),
        grid=grid,
        in_specs=[
            pl.BlockSpec((nb, V, C), lambda b: (b, 0, 0)),
            pl.BlockSpec((nb, k * V, V), lambda b: (b, 0, 0)),
            pl.BlockSpec((O, C), lambda b: (0, 0)),
            pl.BlockSpec((O, C), lambda b: (0, 0)),
            pl.BlockSpec((1, O), lambda b: (0, 0)),
        ],
        out_specs=pl.BlockSpec((nb, 1, V * O), lambda b: (b, 0, 0)),
        out_shape=jax.ShapeDtypeStruct((N, 1, V * O), jnp.float32),
        compiler_params=cparams,
    )(xm_vc, sel, w1, wd, bias)

    # --- back to PyTorch layout: (N, O, V) repeated over T -------------------
    out_nvo = out_flat.reshape(N, V, O)
    out_nov = jnp.transpose(out_nvo, (0, 2, 1))          # (N, O, V)
    # TODO(synk): in a fused model this T-broadcast could stay a lazy view
    # instead of being materialized (it dominates bytes written).
    return jnp.broadcast_to(out_nov[:, :, None, :], (N, O, T, V))


# ----------------------------- Pure-JAX reference ---------------------------
def edge_conv_reference(x, conv_w, bn_scale, bn_bias, k):
    N, C, T, V = x.shape
    O = conv_w.shape[0]
    xm = x.mean(axis=2)                                        # (N, C, V)
    inner = -2.0 * jnp.einsum('ncv,ncw->nvw', xm, xm)
    xx = jnp.sum(xm ** 2, axis=1, keepdims=True)               # (N, 1, V)
    pd = -xx - inner - jnp.transpose(xx, (0, 2, 1))
    idx = jax.lax.top_k(pd, k)[1]
    x_nvc = jnp.transpose(xm, (0, 2, 1))
    feature = jax.vmap(lambda xv, iv: xv[iv])(x_nvc, idx)      # (N, V, k, C)
    x_exp = jnp.broadcast_to(x_nvc[:, :, None, :], feature.shape)
    feat = jnp.concatenate([feature - x_exp, x_exp], axis=-1)  # (N, V, k, 2C)
    y = jnp.einsum('nvkc,oc->nvko', feat, conv_w)
    y = y * bn_scale[0] + bn_bias[0]
    y = jnp.where(y > 0, y, 0.2 * y)
    y = y.max(axis=2)                                          # (N, V, O)
    out = jnp.transpose(y, (0, 2, 1))
    return jnp.broadcast_to(out[:, :, None, :], (N, O, T, V))


if __name__ == "__main__":
    # small shapes consistent with EdgeConv: x is (N, C, T, V)
    N, C, T, V = 2, 4, 16, 16
    K = 4
    OUT_CH = 8

    key = jax.random.PRNGKey(0)
    k_x, k_w = jax.random.split(key)

    x = jax.random.normal(k_x, (N, C, T, V), dtype=jnp.float32)

    # Conv2d(2C -> OUT_CH, kernel_size=1, bias=False), kaiming_normal fan_out:
    # std = sqrt(2 / fan_out), fan_out = OUT_CH * 1 * 1
    w = (jax.random.normal(k_w, (OUT_CH, 2 * C), dtype=jnp.float32)
         * math.sqrt(2.0 / OUT_CH))

    # BatchNorm2d(OUT_CH) eval-mode params with bn_init(bn, 1):
    # gamma=1, beta=0, running_mean=0, running_var=1, eps=1e-5
    eps = 1e-5
    gamma = jnp.ones((OUT_CH,), jnp.float32)
    beta = jnp.zeros((OUT_CH,), jnp.float32)
    running_mean = jnp.zeros((OUT_CH,), jnp.float32)
    running_var = jnp.ones((OUT_CH,), jnp.float32)
    bn_scale = (gamma / jnp.sqrt(running_var + eps)).reshape(1, OUT_CH)
    bn_bias = (beta - running_mean * bn_scale[0]).reshape(1, OUT_CH)

    out = jax.jit(functools.partial(edge_conv_forward, k=K))(
        x, w, bn_scale, bn_bias)
    out = jax.block_until_ready(out)

    ref = edge_conv_reference(x, w, bn_scale, bn_bias, K)
    ref = jax.block_until_ready(ref)

    assert out.shape == (N, OUT_CH, T, V), out.shape
    assert out.dtype == jnp.float32
    assert bool(jnp.all(jnp.isfinite(out)))
    assert bool(jnp.allclose(out, ref, rtol=1e-2, atol=1e-2)), (
        float(jnp.max(jnp.abs(out - ref))))

    print("KERNEL_OK")
</pallas_src>

<mosaic_0001>
module attributes {stable_mosaic.version = 11 : i64} {
  func.func @kernel(%arg0: i32, %arg1: memref<1x4x16x16xf32, #tpu.memory_space<vmem>>, %arg2: memref<1x1x256xf32, #tpu.memory_space<vmem>>, %arg3: memref<1x16x4xf32, #tpu.memory_space<vmem>>) attributes {dimension_semantics = [#tpu.dimension_semantics<parallel>], iteration_bounds = array<i64: 2>, scalar_prefetch = 0 : i64, scratch_operands = 0 : i64, tpu.core_type = #tpu.core_type<tc>, window_params = [{transform_indices = @transform_0, window_bounds = array<i64: 1, 4, 16, 16>}, {transform_indices = @transform_1, window_bounds = array<i64: 1, 1, 256>}, {transform_indices = @transform_2, window_bounds = array<i64: 1, 16, 4>}]} {
    %c0 = arith.constant 0 : index
    %c0_0 = arith.constant 0 : index
    %c0_1 = arith.constant 0 : index
    %c0_2 = arith.constant 0 : index
    %0 = vector.load %arg1[%c0, %c0_0, %c0_1, %c0_2] : memref<1x4x16x16xf32, #tpu.memory_space<vmem>>, vector<1x4x16x16xf32>
    %cst = arith.constant dense<0.000000e+00> : vector<1x4x16xf32>
    %1 = vector.multi_reduction <add>, %0, %cst [2] : vector<1x4x16x16xf32> to vector<1x4x16xf32>
    %cst_3 = arith.constant 1.600000e+01 : f32
    %2 = vector.broadcast %cst_3 : f32 to vector<1x4x16xf32>
    %3 = arith.divf %1, %2 : vector<1x4x16xf32>
    %4 = tpu.transpose %3, [0, 2, 1] : vector<1x4x16xf32> -> vector<1x16x4xf32>
    "tpu.trace_start"() <{level = 10 : i32, message = "nvc,nwc->nvw"}> : () -> ()
    %cst_4 = arith.constant dense<0.000000e+00> : vector<1x16x16xf32>
    %5 = tpu.matmul %4, %4, %cst_4 {dimension_numbers = #tpu.dot_dimension_numbers<[2], [2], [1], [1], [0, 0, 0, 1, 1, 1], [0], [0]>} : vector<1x16x4xf32>, vector<1x16x4xf32>, vector<1x16x16xf32> -> vector<1x16x16xf32>
    "tpu.trace_stop"() : () -> ()
    %6 = arith.mulf %4, %4 : vector<1x16x4xf32>
    %cst_5 = arith.constant dense<0.000000e+00> : vector<1x16xf32>
    %7 = vector.multi_reduction <add>, %6, %cst_5 [2] : vector<1x16x4xf32> to vector<1x16xf32>
    %cst_6 = arith.constant 2.000000e+00 : f32
    %8 = vector.broadcast %cst_6 : f32 to vector<1x16x16xf32>
    %9 = arith.mulf %8, %5 : vector<1x16x16xf32>
    %10 = vector.shape_cast %7 : vector<1x16xf32> to vector<1x16x1xf32>
    %11 = vector.broadcast %10 : vector<1x16x1xf32> to vector<1x16x16xf32>
    %12 = arith.subf %9, %11 : vector<1x16x16xf32>
    %13 = vector.shape_cast %7 : vector<1x16xf32> to vector<1x1x16xf32>
    %14 = vector.broadcast %13 : vector<1x1x16xf32> to vector<1x16x16xf32>
    %15 = arith.subf %12, %14 : vector<1x16x16xf32>
    %16 = vector.shape_cast %15 : vector<1x16x16xf32> to vector<1x1x256xf32>
    %c0_7 = arith.constant 0 : index
    %c0_8 = arith.constant 0 : index
    %c0_9 = arith.constant 0 : index
    %17 = vector.load %arg2[%c0_7, %c0_8, %c0_9] : memref<1x1x256xf32, #tpu.memory_space<vmem>>, vector<1x1x256xf32>
    tpu.vector_store %arg2[%c0_7, %c0_8, %c0_9], %16 {strides = array<i32>} : memref<1x1x256xf32, #tpu.memory_space<vmem>>, vector<1x1x256xf32>,
    %c0_10 = arith.constant 0 : index
    %c0_11 = arith.constant 0 : index
    %c0_12 = arith.constant 0 : index
    %18 = vector.load %arg3[%c0_10, %c0_11, %c0_12] : memref<1x16x4xf32, #tpu.memory_space<vmem>>, vector<1x16x4xf32>
    tpu.vector_store %arg3[%c0_10, %c0_11, %c0_12], %4 {strides = array<i32>} : memref<1x16x4xf32, #tpu.memory_space<vmem>>, vector<1x16x4xf32>,
    return
  }
  func.func @transform_0(%arg0: i32) -> (i32, i32, i32, i32) {
    %c0_i32 = arith.constant 0 : i32
    %c0_i32_0 = arith.constant 0 : i32
    %c0_i32_1 = arith.constant 0 : i32
    %c0_i32_2 = arith.constant 0 : i32
    return %arg0, %c0_i32, %c0_i32_0, %c0_i32_1 : i32, i32, i32, i32
  }
  func.func @transform_1(%arg0: i32) -> (i32, i32, i32) {
    %c0_i32 = arith.constant 0 : i32
    %c0_i32_0 = arith.constant 0 : i32
    %c0_i32_1 = arith.constant 0 : i32
    return %arg0, %c0_i32, %c0_i32_0 : i32, i32, i32
  }
  func.func @transform_2(%arg0: i32) -> (i32, i32, i32) {
    %c0_i32 = arith.constant 0 : i32
    %c0_i32_0 = arith.constant 0 : i32
    %c0_i32_1 = arith.constant 0 : i32
    return %arg0, %c0_i32, %c0_i32_0 : i32, i32, i32
  }
}

module attributes {stable_mosaic.version = 11 : i64} {
  func.func @kernel(%arg0: i32, %arg1: memref<1x16x4xf32, #tpu.memory_space<vmem>>, %arg2: memref<1x64x16xf32, #tpu.memory_space<vmem>>, %arg3: memref<8x4xf32, #tpu.memory_space<vmem>>, %arg4: memref<8x4xf32, #tpu.memory_space<vmem>>, %arg5: memref<1x8xf32, #tpu.memory_space<vmem>>, %arg6: memref<1x1x128xf32, #tpu.memory_space<vmem>>) attributes {dimension_semantics = [#tpu.dimension_semantics<parallel>], iteration_bounds = array<i64: 2>, scalar_prefetch = 0 : i64, scratch_operands = 0 : i64, tpu.core_type = #tpu.core_type<tc>, window_params = [{transform_indices = @transform_0, window_bounds = array<i64: 1, 16, 4>}, {transform_indices = @transform_1, window_bounds = array<i64: 1, 64, 16>}, {pipeline_mode = #tpu.pipeline_mode<synchronous>, transform_indices = @transform_2, window_bounds = array<i64: 8, 4>}, {pipeline_mode = #tpu.pipeline_mode<synchronous>, transform_indices = @transform_3, window_bounds = array<i64: 8, 4>}, {pipeline_mode = #tpu.pipeline_mode<synchronous>, transform_indices = @transform_4, window_bounds = array<i64: 1, 8>}, {transform_indices = @transform_5, window_bounds = array<i64: 1, 1, 128>}]} {
    %c0 = arith.constant 0 : index
    %c0_0 = arith.constant 0 : index
    %c0_1 = arith.constant 0 : index
    %0 = vector.load %arg1[%c0, %c0_0, %c0_1] : memref<1x16x4xf32, #tpu.memory_space<vmem>>, vector<1x16x4xf32>
    %c0_2 = arith.constant 0 : index
    %c0_3 = arith.constant 0 : index
    %c0_4 = arith.constant 0 : index
    %1 = vector.load %arg2[%c0_2, %c0_3, %c0_4] : memref<1x64x16xf32, #tpu.memory_space<vmem>>, vector<1x64x16xf32>
    %c0_5 = arith.constant 0 : index
    %c0_6 = arith.constant 0 : index
    %2 = vector.load %arg3[%c0_5, %c0_6] : memref<8x4xf32, #tpu.memory_space<vmem>>, vector<8x4xf32>
    %c0_7 = arith.constant 0 : index
    %c0_8 = arith.constant 0 : index
    %3 = vector.load %arg4[%c0_7, %c0_8] : memref<8x4xf32, #tpu.memory_space<vmem>>, vector<8x4xf32>
    %c0_9 = arith.constant 0 : index
    %c0_10 = arith.constant 0 : index
    %4 = vector.load %arg5[%c0_9, %c0_10] : memref<1x8xf32, #tpu.memory_space<vmem>>, vector<1x8xf32>
    %5 = vector.shape_cast %0 : vector<1x16x4xf32> to vector<16x4xf32>
    %cst = arith.constant dense<0.000000e+00> : vector<16x8xf32>
    %6 = tpu.matmul %5, %2, %cst {dimension_numbers = #tpu.dot_dimension_numbers<[1], [1], [0], [0], [0, 0, 1, 0], [], []>} : vector<16x4xf32>, vector<8x4xf32>, vector<16x8xf32> -> vector<16x8xf32>
    %cst_11 = arith.constant dense<0.000000e+00> : vector<16x8xf32>
    %7 = tpu.matmul %5, %3, %cst_11 {dimension_numbers = #tpu.dot_dimension_numbers<[1], [1], [0], [0], [0, 0, 1, 0], [], []>} : vector<16x4xf32>, vector<8x4xf32>, vector<16x8xf32> -> vector<16x8xf32>
    %8 = vector.shape_cast %6 : vector<16x8xf32> to vector<1x16x8xf32>
    "tpu.trace_start"() <{level = 10 : i32, message = "nsv,nvo->nso"}> : () -> ()
    %cst_12 = arith.constant dense<0.000000e+00> : vector<1x64x8xf32>
    %9 = tpu.matmul %1, %8, %cst_12 {dimension_numbers = #tpu.dot_dimension_numbers<[2], [1], [1], [2], [0, 0, 0, 1, 1, 2], [0], [0]>} : vector<1x64x16xf32>, vector<1x16x8xf32>, vector<1x64x8xf32> -> vector<1x64x8xf32>
    "tpu.trace_stop"() : () -> ()
    %10 = vector.extract_strided_slice %9 {offsets = [0, 0, 0], sizes = [1, 16, 8], strides = [1, 1, 1]} : vector<1x64x8xf32> to vector<1x16x8xf32>
    %11 = vector.extract_strided_slice %9 {offsets = [0, 16, 0], sizes = [1, 16, 8], strides = [1, 1, 1]} : vector<1x64x8xf32> to vector<1x16x8xf32>
    %12 = arith.maximumf %10, %11 : vector<1x16x8xf32>
    %13 = vector.extract_strided_slice %9 {offsets = [0, 32, 0], sizes = [1, 16, 8], strides = [1, 1, 1]} : vector<1x64x8xf32> to vector<1x16x8xf32>
    %14 = arith.maximumf %12, %13 : vector<1x16x8xf32>
    %15 = vector.extract_strided_slice %9 {offsets = [0, 48, 0], sizes = [1, 16, 8], strides = [1, 1, 1]} : vector<1x64x8xf32> to vector<1x16x8xf32>
    %16 = arith.maximumf %14, %15 : vector<1x16x8xf32>
    %17 = vector.shape_cast %7 : vector<16x8xf32> to vector<1x16x8xf32>
    %18 = arith.addf %16, %17 : vector<1x16x8xf32>
    %19 = vector.shape_cast %4 : vector<1x8xf32> to vector<1x1x8xf32>
    %20 = vector.broadcast %19 : vector<1x1x8xf32> to vector<1x16x8xf32>
    %21 = arith.addf %18, %20 : vector<1x16x8xf32>
    %cst_13 = arith.constant 0.000000e+00 : f32
    %22 = vector.broadcast %cst_13 : f32 to vector<1x16x8xf32>
    %23 = arith.cmpf ogt, %21, %22 : vector<1x16x8xf32>
    %cst_14 = arith.constant 2.000000e-01 : f32
    %24 = vector.broadcast %cst_14 : f32 to vector<1x16x8xf32>
    %25 = arith.mulf %24, %21 : vector<1x16x8xf32>
    %26 = arith.select %23, %21, %25 : vector<1x16x8xi1>, vector<1x16x8xf32>
    %27 = vector.shape_cast %26 : vector<1x16x8xf32> to vector<1x1x128xf32>
    %c0_15 = arith.constant 0 : index
    %c0_16 = arith.constant 0 : index
    %c0_17 = arith.constant 0 : index
    %28 = vector.load %arg6[%c0_15, %c0_16, %c0_17] : memref<1x1x128xf32, #tpu.memory_space<vmem>>, vector<1x1x128xf32>
    tpu.vector_store %arg6[%c0_15, %c0_16, %c0_17], %27 {strides = array<i32>} : memref<1x1x128xf32, #tpu.memory_space<vmem>>, vector<1x1x128xf32>,
    return
  }
  func.func @transform_0(%arg0: i32) -> (i32, i32, i32) {
    %c0_i32 = arith.constant 0 : i32
    %c0_i32_0 = arith.constant 0 : i32
    %c0_i32_1 = arith.constant 0 : i32
    return %arg0, %c0_i32, %c0_i32_0 : i32, i32, i32
  }
  func.func @transform_1(%arg0: i32) -> (i32, i32, i32) {
    %c0_i32 = arith.constant 0 : i32
    %c0_i32_0 = arith.constant 0 : i32
    %c0_i32_1 = arith.constant 0 : i32
    return %arg0, %c0_i32, %c0_i32_0 : i32, i32, i32
  }
  func.func @transform_2(%arg0: i32) -> (i32, i32) {
    %c0_i32 = arith.constant 0 : i32
    %c0_i32_0 = arith.constant 0 : i32
    %c0_i32_1 = arith.constant 0 : i32
    return %c0_i32, %c0_i32_0 : i32, i32
  }
  func.func @transform_3(%arg0: i32) -> (i32, i32) {
    %c0_i32 = arith.constant 0 : i32
    %c0_i32_0 = arith.constant 0 : i32
    %c0_i32_1 = arith.constant 0 : i32
    return %c0_i32, %c0_i32_0 : i32, i32
  }
  func.func @transform_4(%arg0: i32) -> (i32, i32) {
    %c0_i32 = arith.constant 0 : i32
    %c0_i32_0 = arith.constant 0 : i32
    %c0_i32_1 = arith.constant 0 : i32
    return %c0_i32, %c0_i32_0 : i32, i32
  }
  func.func @transform_5(%arg0: i32) -> (i32, i32, i32) {
    %c0_i32 = arith.constant 0 : i32
    %c0_i32_0 = arith.constant 0 : i32
    %c0_i32_1 = arith.constant 0 : i32
    return %arg0, %c0_i32, %c0_i32_0 : i32, i32, i32
  }
}

</mosaic_0001>

<bundles_post_ra>
// kernel: eq.1
= control target key start
LH: loop header
LB: loop body
LE: loop exit
PB: predicated region body
PF: predicated region fallthrough
CT: control target
= control target key end

     0   :  { %s29_s10 = smov 3  ;;  %s10_s11 = smov 3  ;;  %vm12_vm0 = vcmask 130048   ;;  %vm19_vm1 = vcmask 523648   ;;  %vm26_vm2 = vcmask 392448   ;;  %vm33_vm3 = vcmask 261248   ;;  %s67_s0 = inlined_call_operand.vmem [shape: s32[2,4,16], index: 0, kind: input, shape index: {}]   ;;  %s68_s1 = inlined_call_operand.vmem [shape: s32[2,64], index: 1, kind: output, shape index: {}]  }
   0x1   :  { %v41_v0 = vld [vmem:[%s67_s0 + $0x4] sm:$0xf]  ;;  %v8_v1 = vld [vmem:[%s67_s0] sm:$0xf]  ;;  %s15_s0 = smov 3  ;;  %s22_s12 = smov 3 }
   0x2   :  { %7 = vst [vmem:[#allocation1 + $0x8] sm:$0xf] %v41_v0  ;;  %9 = vst [vmem:[#allocation1] sm:$0xf] %v8_v1  ;;  %s45_s13 = smov 48   ;;  %s46_s14 = smov 16  }
   0x3   :  { %s47_s15 = smov 32  }
   0x9   :  { %v16_v2 = vld [vmem:[#allocation1 + $0x3] ss:$8 sm:%s15_s0]   ;;  %v30_v3 = vld [vmem:[#allocation1 + $0x1] ss:$8 sm:%s29_s10]   ;;  %v11_v4 = vld [vmem:[#allocation1] ss:$8 sm:%s10_s11]  }
   0xa   :  { %17 = vrot.lane.b32.xlu0 %v16_v2, %s45_s13  ;;  %31 = vrot.lane.b32.xlu1 %v30_v3, %s46_s14  ;;  %v23_v5 = vld [vmem:[#allocation1 + $0x2] ss:$8 sm:%s22_s12]   ;;  %13 = vst.msk [vmem:[#allocation0] sm:$0x3] %vm12_vm0, %v11_v4  }
   0xe   :  { %24 = vrot.lane.b32.xlu0 %v23_v5, %s47_s15 }
  0x7c   :  { %v18_v6 = vpop.permute.xlu0 %17   ;;  %v32_v7 = vpop.permute.xlu1 %31  }
  0x7d   :  { %20 = vst.msk [vmem:[#allocation0] sm:$0x3] %vm19_vm1, %v18_v6  }
  0x80   :  { %v25_v8 = vpop.permute.xlu0 %24  }
  0x81   :  { %27 = vst.msk [vmem:[#allocation0] sm:$0x3] %vm26_vm2, %v25_v8  }
  0x82   :  { %34 = vst.msk [vmem:[#allocation0] sm:$0x3] %vm33_vm3, %v32_v7  }
  0x89   :  { %v38_v9 = vld [vmem:[#allocation0] sm:$0x3] }
  0x8a   :  { %40 = vst [vmem:[%s68_s1] sm:$0x3] %v38_v9 }

// kernel: edge_conv_forward.2
= control target key start
LH: loop header
LB: loop body
LE: loop exit
PB: predicated region body
PF: predicated region fallthrough
CT: control target
= control target key end

     0   :  { %8 = vsyncpa [#allocation3], 0  ;;  %s1013_s0 = inlined_call_operand.hbm [shape: f32[2,4,16,16], index: 0, kind: input, shape index: {}]   ;;  %s1014_s1 = inlined_call_operand.vmem [shape: f32[2,1,256], index: 1, kind: output, shape index: {0}]   ;;  %s1015_s2 = inlined_call_operand.vmem [shape: f32[2,16,4], index: 2, kind: output, shape index: {1}]  }
   0x1   :  { %10 = vsyncpa [#allocation3 + $0x1], 0  ;;  %s870_s9 = smov 0   ;;  %s872_s10 = smov 0  }
   0x2   :  { %s874_s11 = smov 0   ;;  %s876_s12 = smov 0  }
   0x3 LB: > { %s889_s13 = sadd.s32 4294967295, %s839_s12   ;;  %s892_s14 = sadd.s32 1, %s839_s12   ;;  %s839_s12 = sphi %s876_s12, %s1022_s12   ;;  %s835_s11 = sphi %s874_s11, %s1021_s11   ;;  %s831_s10 = sphi %s872_s10, %s1020_s10   ;;  %s827_s9 = sphi %s870_s9, %s1019_s9  }
   0x4   : > { %s20_s15 = ssub.s32 %s839_s12, %s892_s14  ;;  %s23_s16 = sadd.s32 1, %s835_s11 }
   0x5   : > { %p21_p0 = scmp.eq.s32.totalorder %s20_s15, 0  ;;  %p30_p1 = scmp.ne.s32.totalorder %s835_s11, %s831_s10 }
   0x6   : > { %p31_p2 = scmp.eq.s32.totalorder %s839_s12, 0  ;;  %p36_p3 = scmp.ne.s32.totalorder %s831_s10, %s827_s9 }
   0x7   : > { %s902_s17 = scalar_select %p21_p0, %s835_s11, %s23_s16  }
   0x8   : > { %p32_p4 = por %p31_p2, %p30_p1  ;;  %p37_p5 = scmp.eq.s32.totalorder %s889_s13, 0 }
   0x9   : > { %p729_p6 = scmp.lt.s32.totalorder %s839_s12, 2  ;;  %s112_s19 = sand.u32 1, %s835_s11  }
   0xa   : > { %p906_p7 = por %p37_p5, %p36_p3  ;;  %s690_s20 = sshll.u32 %s112_s19, 6 }
   0xb   : > { %s704_s21 = sshll.u32 %s839_s12, 10  ;;  %s116_s25 = scalar_lea.vmem [#allocation2], %s690_s20 }
   0xc   : > { %s915_s24 = scalar_lea.hbm %s1013_s0, %s704_s21  ;;  %s123_s26 = sshll.u32 %s116_s25, 4  ;;  %s917_s26 = int_to_ptr.vmem [resolvable:$true] %s123_s26 }
   0xd   : > { %p919_p8 = pnand %p729_p6, %p32_p4  ;;  %s924_s28 = scalar_lea.sflag [#allocation3], %s112_s19 }
   0xe   : > { %s775_s29 = scalar_lea.hbm %s915_s24, 1024  ;;  %s780_s4 = scalar_lea.hbm %s1013_s0, 2048 }
   0xf   : > { %p776_p10 = scmp.ne.s32.totalorder %s915_s24, %s775_s29  ;;  %p777_p11 = pneg %p919_p8 }
  0x10   : > { %p781_p0 = scmp.lt.u32.totalorder %s915_s24, %s1013_s0  ;;  %p782_p1 = scmp.lt.u32.totalorder %s780_s4, %s775_s29 }
  0x11   : > { %p778_p12 = pnand %p777_p11, %p776_p10  ;;  %p784_p3 = scmp.lt.u32.totalorder %s775_s29, %s915_s24 }
  0x12   : > { %p783_p2 = por %p782_p1, %p781_p0 }
  0x13   : > { %p779_p13 = pneg %p778_p12 }
  0x14   : > { %p785_p4 = por %p784_p3, %p783_p2 }
  0x16   : > { %p786_p5 = pnand %p785_p4, %p779_p13 }
  0x18   : > { %789 = shalt.err (!%p786_p5)
}
  0x19   : > { %s790_s7 = scalar_lea.vmem %s917_s26, 1024  ;;  %s841_s8 = smov [#allocation2]  }
  0x1a   : > { %p791_p6 = scmp.ne.s32.totalorder %s917_s26, %s790_s7  ;;  %s795_s9 = sshll.u32 %s841_s8, 4  ;;  %s796_s9 = int_to_ptr.vmem [resolvable:$false] %s795_s9 }
  0x1b   : > { %s797_s15 = scalar_lea.vmem %s796_s9, 2048  ;;  %p798_p9 = scmp.lt.s32.totalorder %s917_s26, %s796_s9 }
  0x1c   : > { %p793_p10 = pnand %p791_p6, %p777_p11  ;;  %p799_p0 = scmp.lt.s32.totalorder %s797_s15, %s790_s7 }
  0x1e   : > { %p794_p12 = pneg %p793_p10  ;;  %p800_p1 = por %p799_p0, %p798_p9 }
  0x20   : > { %p801_p2 = pnand %p800_p1, %p794_p12 }
  0x22   : > { %804 = shalt.err (!%p801_p2)
}
  0x23   : > { %s842_s16 = smov 128   ;;  %s843_s19 = smov 8  }
  0x24   : > { %728 = dma.hbm_to_vmem [thread:$0]  (!%p919_p8), %s915_s24, 1024, %s917_s26, %s924_s28, %s842_s16, %s842_s16, %s843_s19  }
  0x25   : > { %p131_p11 = scmp.lt.s32.totalorder %s839_s12, 3  ;;  %p1018_p13 = scmp.ge.s32.totalorder %s839_s12, 1 }
  0x27   : > { %p132_p3 = pnand %p1018_p13, %p131_p11 }
  0x28   : > { %s137_s20 = sand.u32 (!%p132_p3), 1, %s831_s10  }
  0x29   : > { %135 = sbr.rel (%p132_p3) target bundleno = 609 (0x261), region = 24  ;;  %s694_s21 = sshll.u32 (!%p132_p3), %s137_s20, 6 }
  0x2a   : > { %s138_s22 = scalar_lea.sflag (!%p132_p3), [#allocation3], %s137_s20  ;;  %s141_s23 = scalar_lea.vmem (!%p132_p3), [#allocation2], %s694_s21 }
  0x30   : > { %822 = dma.done.wait (%p906_p7), %s138_s22, 1024  }
  0x31   : > { %824 = vsyncadd (%p906_p7), %s138_s22, 4294966272  ;;  %vm183_vm0 = vcmask 130048   ;;  %v175_v0 = vld [vmem:[%s141_s23] sm:$0xff]  ;;  %v176_v1 = vld [vmem:[%s141_s23 + $0x8] sm:$0xff]  ;;  %vm229_vm1 = vcmask 1041409   ;;  %vm231_vm2 = vcmask 1042434   ;;  %v364_v58 = vlaneseq }
  0x32   : > { %v177_v2 = vld [vmem:[%s141_s23 + $0x10] sm:$0xff]  ;;  %v178_v3 = vld [vmem:[%s141_s23 + $0x18] sm:$0xff]  ;;  %v179_v4 = vld [vmem:[%s141_s23 + $0x20] sm:$0xff]  ;;  %v184_v6 = vsel %vm183_vm0, %v175_v0, 0.0  ;;  %v185_v7 = vsel %vm183_vm0, %v176_v1, 0.0  ;;  %vm233_vm3 = vcmask 1043459  }
  0x33   : > { %v180_v5 = vld [vmem:[%s141_s23 + $0x28] sm:$0xff]  ;;  %v193_v8 = vsel %vm183_vm0, %v177_v2, 0.0  ;;  %v181_v9 = vld [vmem:[%s141_s23 + $0x30] sm:$0xff]  ;;  %v182_v10 = vld [vmem:[%s141_s23 + $0x38] sm:$0xff]  ;;  %v186_v11 = vadd.f32 %v185_v7, %v184_v6  ;;  %v194_v12 = vsel %vm183_vm0, %v178_v3, 0.0  ;;  %v202_v13 = vsel %vm183_vm0, %v179_v4, 0.0 }
  0x34   : > { %v203_v14 = vsel %vm183_vm0, %v180_v5, 0.0  ;;  %v195_v15 = vadd.f32 %v194_v12, %v193_v8  ;;  %v211_v17 = vsel %vm183_vm0, %v181_v9, 0.0  ;;  %v212_v18 = vsel %vm183_vm0, %v182_v10, 0.0  ;;  %p166_p7 = scmp.lt.s32.totalorder %s889_s13, 1  ;;  %s847_s26 = smov 16  }
  0x35   : > { %v204_v16 = vadd.f32 %v203_v14, %v202_v13  ;;  %v187_v19 = vrot.slane %v186_v11, 4  ;;  %v213_v20 = vadd.f32 %v212_v18, %v211_v17  ;;  %vm268_vm4 = vcmask 31744   ;;  %s848_s27 = smov 80   ;;  %s849_s28 = smov 32  }
  0x36   : > { %v196_v21 = vrot.slane %v195_v15, 4  ;;  %s1024_s13 = smov (!%p166_p7, %s889_s13), 1  ;;  %vm718_vm5 = vmpackc.low %vm268_vm4, %vm268_vm4  ;;  %v365_v59 = vand.u32 127, %v364_v58  ;;  %v986_v61 = vshrl.u32 %v364_v58, 7  ;;  %v844_v62 = vmov 1983009808  }
  0x37   : > { %v205_v22 = vrot.slane %v204_v16, 4  ;;  %v188_v23 = vadd.f32 %v187_v19, %v186_v11  ;;  %v214_v24 = vrot.slane %v213_v20, 4  ;;  %s705_s12 = sshll.u32 %s1024_s13, 4  ;;  %v392_v63 = vunpack.c.l.s4 %v844_v62  ;;  %s850_s29 = smov 64  }
  0x38   : > { %v197_v25 = vadd.f32 %v196_v21, %v195_v15  ;;  %s174_s25 = scalar_lea.vmem %s1015_s2, %s705_s12  ;;  %v370_v60 = vadd.s32 4294967288, %v365_v59  ;;  %v845_v1 = vmov 1934713408   ;;  %v368_v4 = vsub.s32 %v365_v59, %v986_v61  ;;  %s851_s30 = smov 48  }
  0x39   : > { %v206_v26 = vadd.f32 %v205_v22, %v204_v16  ;;  %v189_v27 = vrot.slane %v188_v23, 2  ;;  %v215_v28 = vadd.f32 %v214_v24, %v213_v20  ;;  %v407_v2 = vunpack.c.l.s4 %v845_v1  ;;  %s852_s3 = smov 96   ;;  %s853_s4 = smov 112  }
  0x3a   : > { %v198_v29 = vrot.slane %v197_v25, 2  ;;  %v373_v0 = vsub.s32 %v370_v60, %v986_v61  ;;  %v393_v6 = vunpack.c.0.s8 %v392_v63  ;;  %vm375_vm6 = vcmask 130112   ;;  %s695_s5 = sshll.u32 %s1024_s13, 1 }
  0x3b   : > { %v207_v30 = vrot.slane %v206_v26, 2  ;;  %v190_v31 = vadd.f32 %v189_v27, %v188_v23  ;;  %v216_v32 = vrot.slane %v215_v28, 2  ;;  %v408_v9 = vunpack.c.0.s8 %v407_v2  ;;  %s169_s8 = scalar_lea.vmem %s1014_s1, %s695_s5 }
  0x3c   : > { %v199_v33 = vadd.f32 %v198_v29, %v197_v25  ;;  %v396_v14 = vsub.s32 %v393_v6, %v986_v61  ;;  %v846_v19 = vmov 0.0   ;;  %vm545_vm7 = vcmask 261120  }
  0x3d   : > { %v208_v34 = vadd.f32 %v207_v30, %v206_v26  ;;  %v191_v35 = vrot.slane %v190_v31, 1  ;;  %v217_v36 = vadd.f32 %v216_v32, %v215_v28  ;;  %v411_v17 = vsub.s32 %v408_v9, %v986_v61 }
  0x3e   : > { %v200_v37 = vrot.slane %v199_v33, 1  ;;  %vm547_vm8 = vcmask 392192   ;;  %vm549_vm9 = vcmask 523264   ;;  %vm551_vm10 = vcmask 654336  }
  0x3f   : > { %v209_v38 = vrot.slane %v208_v34, 1  ;;  %v192_v39 = vadd.f32 %v191_v35, %v190_v31  ;;  %v218_v40 = vrot.slane %v217_v36, 1  ;;  %vm553_vm11 = vcmask 785408  }
  0x40   : > { %v201_v41 = vadd.f32 %v200_v37, %v199_v33  ;;  %vm555_vm12 = vcmask 916480   ;;  %vm584_vm13 = vcmp.lt.s32.totalorder %v364_v58, 256 }
  0x41   : > { %v210_v42 = vadd.f32 %v209_v38, %v208_v34  ;;  %v219_v43 = vadd.f32 %v218_v40, %v217_v36  ;;  %v221_v44 = vmul.f32 0.0625, %v192_v39 }
  0x42   : > { %v222_v45 = vmul.f32 0.0625, %v201_v41 }
  0x43   : > { %v223_v46 = vmul.f32 0.0625, %v210_v42  ;;  %v224_v47 = vmul.f32 0.0625, %v219_v43 }
  0x44   : > { %v230_v48 = vsel %vm229_vm1, %v222_v45, %v221_v44 }
  0x45   : > { %v232_v49 = vsel %vm231_vm2, %v223_v46, %v230_v48 }
  0x46   : > { %v234_v50 = vsel %vm233_vm3, %v224_v47, %v232_v49 }
  0x47   : > { %236 = vxpose.xlu0.b32.start.end [1/1] (short) (narrow) %v234_v50, 16 }
  0xc7   : > { %v252_v51 = vpop.trf.xlu0 }
  0xc8   : > { %587 = vst.msk [vmem:[%s174_s25] sm:$0xff] %vm268_vm4, %v252_v51  ;;  %714 = vmatprep.mubr.msk.f32.mxu0 %vm268_vm4, %v252_v51  ;;  %v350_v52 = vmul.f32 %v252_v51, %v252_v51 }
  0xca   : > { %v352_v53 = vsel %vm268_vm4, %v350_v52, 0.0 }
  0xcb   : > { %353 = vadd.xlane.f32.xlu0 %v352_v53  ;;  %v253_v54 = vpop.trf.xlu0 }
  0xcc   : > { %588 = vst.msk [vmem:[%s174_s25 + $0x8] sm:$0xff] %vm268_vm4, %v253_v54  ;;  %v717_v55 = vpack.c.bf16 %v253_v54, %v252_v51  ;;  %v351_v56 = vmul.f32 %v253_v54, %v253_v54 }
  0xce   : > { %719 = vmatprep.subr.msk.bf16.mxu0 %vm718_vm5, %v717_v55  ;;  %v355_v57 = vsel %vm268_vm4, %v351_v56, 0.0 }
  0xcf   : > { %722 = vmatpush3.bf16.xpose.msk.msra.mxu0 %vm718_vm5, %v717_v55  ;;  %356 = vadd.xlane.f32.xlu1 %v355_v57 }
  0xd6   : > { %715 = vmatmul.mubr.msk.f32.vlgmr.msra.gmra.mrb[0].mxu0 %vm268_vm4, %v253_v54 }
 0x158   : > { %v354_v5 = vpop.xlane.xlu0 %353 }
 0x159   : > { %v369_v12 = vrot.slane %v354_v5, %v368_v4 }
 0x15c   : > { %v357_v3 = vpop.xlane.xlu1 %356 }
 0x15d   : > { %v374_v7 = vrot.slane %v357_v3, %v373_v0  ;;  %v854_v0 = vmov 1966171168  }
 0x15e   : > { %v568_v1 = vunpack.c.l.s4 %v854_v0 }
 0x15f   : > { %v376_v16 = vsel %vm375_vm6, %v374_v7, %v369_v12 }
 0x1a9   : > { %v716_v8 = vpop.f32.mrb[0].mxu0 }
 0x1aa   : > { %v359_v10 = vmul.f32 2.0, %v716_v8  ;;  %v341_v11 = vpop.f32.mrb[1].mxu0  ;;  %v569_v8 = vunpack.c.0.s8 %v568_v1 }
 0x1ab   : > { %v358_v15 = vmul.f32 2.0, %v341_v11 }
 0x1ac   : > { %v361_v13 = vsub.f32 %v359_v10, %v357_v3 }
 0x1ad   : > { %v360_v22 = vsub.f32 %v358_v15, %v354_v5 }
 0x1ae   : > { %v389_v18 = vsub.f32 %v361_v13, %v376_v16 }
 0x1af   : > { %v388_v25 = vsub.f32 %v360_v22, %v376_v16 }
 0x1b0   : > { %v439_v20 = vcombine.high %v389_v18, %v846_v19  ;;  %v446_v21 = vrot.slane %v389_v18, %v396_v14 }
 0x1b1   : > { %v397_v30 = vrot.slane %v388_v25, %v396_v14  ;;  %v390_v33 = vcombine.high %v388_v25, %v846_v19 }
 0x1b2   : > { %v461_v23 = vrot.slane %v446_v21, %v411_v17  ;;  %v453_v24 = vrot.slane %v439_v20, %v396_v14  ;;  %v454_v28 = vcombine.high %v446_v21, %v846_v19 }
 0x1b3   : > { %v412_v32 = vrot.slane %v397_v30, %v411_v17  ;;  %v405_v35 = vcombine.high %v397_v30, %v846_v19  ;;  %v404_v37 = vrot.slane %v390_v33, %v396_v14  ;;  %v572_v14 = vsub.s32 %v569_v8, %v986_v61 }
 0x1b4   : > { %v484_v26 = vcombine.high %v461_v23, %v846_v19  ;;  %v476_v27 = vrot.slane %v453_v24, %v411_v17  ;;  %v468_v31 = vrot.slane %v454_v28, %v411_v17  ;;  %v469_v40 = vcombine.high %v453_v24, %v846_v19 }
 0x1b5   : > { %v435_v34 = vcombine.high %v412_v32, %v846_v19  ;;  %v419_v36 = vrot.slane %v405_v35, %v411_v17  ;;  %v427_v38 = vrot.slane %v404_v37, %v411_v17  ;;  %v420_v44 = vcombine.high %v404_v37, %v846_v19 }
 0x1b6   : > { %517 = vrot.lane.b32.xlu1 %v484_v26, %s847_s26  ;;  %v486_v29 = vcombine.high %v476_v27, %v846_v19  ;;  %v485_v39 = vcombine.high %v468_v31, %v846_v19  ;;  %v483_v41 = vrot.slane %v469_v40, %v411_v17 }
 0x1b7   : > { %v436_v42 = vcombine.high %v419_v36, %v846_v19  ;;  %v437_v43 = vcombine.high %v427_v38, %v846_v19  ;;  %v434_v45 = vrot.slane %v420_v44, %v411_v17 }
 0x1b8   : > { %533 = vrot.lane.b32.xlu0 %v486_v29, %s848_s27  ;;  %v487_v47 = vcombine.high %v483_v41, %v846_v19 }
 0x1b9   : > { %v438_v46 = vcombine.high %v434_v45, %v846_v19 }
 0x1ba   : > { %521 = vrot.lane.b32.xlu1 %v468_v31, %s849_s28 }
 0x1be   : > { %529 = vrot.lane.b32.xlu1 %v476_v27, %s850_s29 }
 0x1c2   : > { %489 = vrot.lane.b32.xlu1 %v435_v34, %s847_s26 }
 0x1c6   : > { %493 = vrot.lane.b32.xlu1 %v419_v36, %s849_s28 }
 0x1ca   : > { %501 = vrot.lane.b32.xlu1 %v427_v38, %s850_s29 }
 0x1ce   : > { %525 = vrot.lane.b32.xlu1 %v485_v39, %s851_s30 }
 0x1d2   : > { %537 = vrot.lane.b32.xlu1 %v483_v41, %s852_s3 }
 0x1d6   : > { %497 = vrot.lane.b32.xlu1 %v436_v42, %s851_s30 }
 0x1da   : > { %505 = vrot.lane.b32.xlu1 %v437_v43, %s848_s27 }
 0x1de   : > { %509 = vrot.lane.b32.xlu1 %v434_v45, %s852_s3 }
 0x1e2   : > { %513 = vrot.lane.b32.xlu1 %v438_v46, %s853_s4 }
 0x1e6   : > { %541 = vrot.lane.b32.xlu1 %v487_v47, %s853_s4 }
 0x228   : > { %v518_v48 = vpop.permute.xlu1 %517 }
 0x229   : > { %v557_v59 = vsel %vm183_vm0, %v461_v23, %v518_v48 }
 0x22a   : > { %v534_v6 = vpop.permute.xlu0 %533 }
 0x22c   : > { %v522_v49 = vpop.permute.xlu1 %521 }
 0x22d   : > { %v558_v60 = vsel %vm545_vm7, %v557_v59, %v522_v49 }
 0x230   : > { %v530_v50 = vpop.permute.xlu1 %529 }
 0x234   : > { %v490_v51 = vpop.permute.xlu1 %489 }
 0x235   : > { %v544_v2 = vsel %vm183_vm0, %v412_v32, %v490_v51 }
 0x238   : > { %v494_v52 = vpop.permute.xlu1 %493 }
 0x239   : > { %v546_v3 = vsel %vm545_vm7, %v544_v2, %v494_v52 }
 0x23c   : > { %v502_v53 = vpop.permute.xlu1 %501 }
 0x240   : > { %v526_v54 = vpop.permute.xlu1 %525 }
 0x241   : > { %v559_v62 = vsel %vm547_vm8, %v558_v60, %v526_v54 }
 0x242   : > { %v560_v4 = vsel %vm549_vm9, %v559_v62, %v530_v50 }
 0x243   : > { %v561_v9 = vsel %vm551_vm10, %v560_v4, %v534_v6 }
 0x244   : > { %v538_v55 = vpop.permute.xlu1 %537 }
 0x245   : > { %v562_v12 = vsel %vm553_vm11, %v561_v9, %v538_v55 }
 0x248   : > { %v498_v56 = vpop.permute.xlu1 %497 }
 0x249   : > { %v548_v5 = vsel %vm547_vm8, %v546_v3, %v498_v56 }
 0x24a   : > { %v550_v10 = vsel %vm549_vm9, %v548_v5, %v502_v53 }
 0x24c   : > { %v506_v57 = vpop.permute.xlu1 %505 }
 0x24d   : > { %v552_v11 = vsel %vm551_vm10, %v550_v10, %v506_v57 }
 0x250   : > { %v510_v63 = vpop.permute.xlu1 %509 }
 0x251   : > { %v554_v13 = vsel %vm553_vm11, %v552_v11, %v510_v63 }
 0x254   : > { %v514_v7 = vpop.permute.xlu1 %513 }
 0x255   : > { %v556_v16 = vsel %vm555_vm12, %v554_v13, %v514_v7 }
 0x258   : > { %v542_v15 = vpop.permute.xlu1 %541 }
 0x259   : > { %v563_v17 = vsel %vm555_vm12, %v562_v12, %v542_v15 }
 0x25a   : > { %v566_v18 = vcombine.low %v556_v16, %v563_v17 }
 0x25c   : > { %v573_v19 = vrot.slane %v566_v18, %v572_v14 }
 0x25e   : > { %v580_v20 = vrot.slane %v573_v19, %v572_v14 }
 0x260   : > { %586 = vst.msk [vmem:[%s169_s8] sm:$0x3] %vm584_vm13, %v580_v20 }
 0x261 PF: > { %p13_p8 = scmp.ge.s32.totalorder %s892_s14, 4   ;;  %s1019_s9 = smov %s831_s10 }
 0x262   : > { %s1020_s10 = smov %s835_s11  ;;  %s1021_s11 = smov %s902_s17 }
 0x263   : > { %s1022_s12 = smov %s892_s14  ;;  %15 = sbr.rel (!%p13_p8) target bundleno = 3 (0x3), region = 76 }
 0x26a   :  { %624 = vsyncpa [#allocation3], 1 }
 0x26b   :  { %626 = vsyncpa [#allocation3 + $0x1], 1 }

// kernel: edge_conv_forward.3
= control target key start
LH: loop header
LB: loop body
LE: loop exit
PB: predicated region body
PF: predicated region fallthrough
CT: control target
= control target key end

     0   :  { %s974_s18 = smov 0   ;;  %s1025_s0 = inlined_call_operand.vmem [shape: f32[2,16,4], index: 0, kind: input, shape index: {}]   ;;  %s1026_s1 = inlined_call_operand.vmem [shape: f32[2,64,16], index: 1, kind: input, shape index: {}]   ;;  %s1027_s2 = inlined_call_operand.vmem [shape: f32[8,4], index: 2, kind: input, shape index: {}]   ;;  %s1028_s3 = inlined_call_operand.vmem [shape: f32[8,4], index: 3, kind: input, shape index: {}]   ;;  %s1029_s4 = inlined_call_operand.vmem [shape: f32[1,8], index: 4, kind: input, shape index: {}]   ;;  %s1030_s5 = inlined_call_operand.vmem [shape: f32[2,1,128], index: 5, kind: output, shape index: {}]  }
   0x1 LB: > { %s816_s19 = sadd.s32 4294967295, %s924_s18   ;;  %p820_p0 = scmp.ge.s32.totalorder %s924_s18, 1  ;;  %s924_s18 = sphi %s974_s18, %s15_s18  }
   0x2   : > { %p197_p1 = scmp.lt.s32.totalorder %s924_s18, 3 }
   0x4   : > { %p198_p2 = pnand %p820_p0, %p197_p1 }
   0x5   : > { %v251_v0 = vld [vmem:[%s1027_s2] sm:$0xff] (!%p198_p2)  ;;  %vm254_vm0 = vcmask (!%p198_p2), 31744   ;;  %p228_p3 = scmp.lt.s32.totalorder (!%p198_p2), %s816_s19, 1  ;;  %vm417_vm1 = vcmask (!%p198_p2), 130048   ;;  %v926_v27 = vmov (!%p198_p2), 1983009808   ;;  %v573_v29 = vlaneseq (!%p198_p2) }
   0x6   : > { %201 = sbr.rel (%p198_p2) target bundleno = 617 (0x269), region = 40  ;;  %860 = vmatprep.subr.msk.mxu0 (!%p198_p2), %vm254_vm0, %v251_v0  ;;  %v252_v3 = vld [vmem:[%s1028_s3] sm:$0xff] (!%p198_p2)  ;;  %v571_v28 = vunpack.c.l.s4 (!%p198_p2), %v926_v27  ;;  %v927_v32 = vmov (!%p198_p2), 1934713408   ;;  %v928_v53 = vmov (!%p198_p2), 0.0   ;;  %s929_s9 = smov (!%p198_p2), 64  }
   0x7   : > { %861 = vmatpush3.xpose.msk.msra.mxu0 (!%p198_p2), %vm254_vm0, %v251_v0  ;;  %865 = vmatprep.subr.msk.mxu1 (!%p198_p2), %vm254_vm0, %v252_v3  ;;  %v586_v33 = vunpack.c.l.s4 (!%p198_p2), %v927_v32  ;;  %v839_v35 = vld [vmem:[%s1029_s4] ss:$0 sm:$0xff] (!%p198_p2)  ;;  %v574_v38 = vshrl.u32 (!%p198_p2), %v573_v29, 7  ;;  %s930_s10 = smov (!%p198_p2), 72   ;;  %s931_s11 = smov (!%p198_p2), 80   ;;  %vm727_vm4 = vcmask (!%p198_p2), 64512  }
   0x8   : > { %866 = vmatpush3.xpose.msk.msra.mxu1 (!%p198_p2), %vm254_vm0, %v252_v3  ;;  %v572_v37 = vunpack.c.0.s8 (!%p198_p2), %v571_v28  ;;  %s932_s12 = smov (!%p198_p2), 8   ;;  %s933_s13 = smov (!%p198_p2), 32   ;;  %vm730_vm5 = vcmask (!%p198_p2), 195584   ;;  %vm732_vm6 = vcmask (!%p198_p2), 261120   ;;  %vm734_vm7 = vcmask (!%p198_p2), 326656  }
   0x9   : > { %v587_v41 = vunpack.c.0.s8 (!%p198_p2), %v586_v33  ;;  %s934_s14 = smov (!%p198_p2), 16   ;;  %s935_s15 = smov (!%p198_p2), 24   ;;  %vm736_vm8 = vcmask (!%p198_p2), 392192   ;;  %vm738_vm9 = vcmask (!%p198_p2), 457728   ;;  %vm740_vm10 = vcmask (!%p198_p2), 523264  }
   0xa   : > { %v575_v44 = vsub.s32 (!%p198_p2), %v572_v37, %v574_v38  ;;  %s936_s16 = smov (!%p198_p2), 88   ;;  %s937_s17 = smov (!%p198_p2), 48   ;;  %vm742_vm11 = vcmask (!%p198_p2), 588800   ;;  %vm744_vm12 = vcmask (!%p198_p2), 654336   ;;  %vm746_vm13 = vcmask (!%p198_p2), 719872  }
   0xb   : > { %v590_v47 = vsub.s32 (!%p198_p2), %v587_v41, %v574_v38  ;;  %s938_s20 = smov (!%p198_p2), 40   ;;  %s939_s21 = smov (!%p198_p2), 96   ;;  %vm748_vm14 = vcmask (!%p198_p2), 785408   ;;  %vm750_vm15 = vcmask (!%p198_p2), 850944  }
   0xc   : > { %s941_s23 = smov (!%p198_p2), 112   ;;  %s942_s24 = smov (!%p198_p2), 104  }
   0xd   : > { %s1032_s19 = smov (!%p228_p3, %s816_s19), 1 }
   0xe   : > { %s842_s22 = sshll.u32 %s1032_s19, 4  ;;  %s843_s26 = sshll.u32 %s1032_s19, 6 }
   0xf   : > { %s232_s25 = scalar_lea.vmem %s1025_s0, %s842_s22  ;;  %s237_s6 = scalar_lea.vmem %s1026_s1, %s843_s26 }
  0x10   : > { %v241_v1 = vld [vmem:[%s232_s25] sm:$0xff]  ;;  %v242_v2 = vld [vmem:[%s232_s25 + $0x8] sm:$0xff]  ;;  %v245_v11 = vld [vmem:[%s237_s6 + $0x10] sm:$0xff]  ;;  %s940_s22 = smov 56   ;;  %s943_s25 = smov 120  }
  0x11   : > { %862 = vmatprep.mubr.msk.f32.mxu0 %vm254_vm0, %v241_v1  ;;  %867 = vmatprep.mubr.msk.f32.mxu1 %vm254_vm0, %v241_v1  ;;  %v243_v4 = vld [vmem:[%s237_s6] sm:$0xff]  ;;  %v244_v9 = vld [vmem:[%s237_s6 + $0x8] sm:$0xff]  ;;  %v249_v12 = vld [vmem:[%s237_s6 + $0x30] sm:$0xff]  ;;  %s240_s28 = scalar_lea.vmem %s1030_s5, %s1032_s19 }
  0x12   : > { %863 = vmatmul.mubr.msk.f32.vlgmr.msra.gmra.mrb[0].mxu0 %vm254_vm0, %v242_v2  ;;  %868 = vmatmul.mubr.msk.f32.vlgmr.msra.gmra.mrb[0].mxu1 %vm254_vm0, %v242_v2  ;;  %v247_v5 = vld [vmem:[%s237_s6 + $0x20] sm:$0xff]  ;;  %v248_v10 = vld [vmem:[%s237_s6 + $0x28] sm:$0xff]  ;;  %v246_v13 = vld [vmem:[%s237_s6 + $0x18] sm:$0xff]  ;;  %vm752_vm0 = vcmask 916480  }
  0x13   : > { %874 = vmatprep.mubr.msk.f32.mxu0 %vm417_vm1, %v243_v4  ;;  %880 = vmatprep.mubr.msk.f32.mxu1 %vm417_vm1, %v247_v5  ;;  %v250_v14 = vld [vmem:[%s237_s6 + $0x38] sm:$0xff] }
  0xe5   : > { %v864_v6 = vpop.f32.mrb[0].mxu0  ;;  %v869_v15 = vpop.f32.mrb[0].mxu1 }
  0xe6   : > { %v330_v7 = vpop.f32.mrb[1].mxu0  ;;  %v408_v16 = vpop.f32.mrb[1].mxu1 }
  0xe7   : > { %v886_v8 = vpack.c.bf16 %v864_v6, %v330_v7 }
  0xe9   : > { %887 = vmatprep.subr.bf16.mxu0 %v886_v8  ;;  %890 = vmatprep.subr.bf16.mxu1 %v886_v8 }
  0xea   : > { %889 = vmatpush3.bf16.msra.mxu0 %v886_v8  ;;  %891 = vmatpush3.bf16.msra.mxu1 %v886_v8 }
  0xed   : > { %875 = vmatmul.mubr.msk.f32.vlgmr.msra.gmra.mrb[2].mxu0 %vm417_vm1, %v244_v9  ;;  %881 = vmatmul.mubr.msk.f32.vlgmr.msra.gmra.mrb[2].mxu1 %vm417_vm1, %v248_v10 }
  0xee   : > { %877 = vmatprep.mubr.msk.f32.mxu0 %vm417_vm1, %v245_v11  ;;  %883 = vmatprep.mubr.msk.f32.mxu1 %vm417_vm1, %v249_v12 }
  0xf1   : > { %878 = vmatmul.mubr.msk.f32.gmra.mrb[4].mxu0 %vm417_vm1, %v246_v13  ;;  %884 = vmatmul.mubr.msk.f32.gmra.mrb[4].mxu1 %vm417_vm1, %v250_v14 }
 0x1c0   : > { %v876_v17 = vpop.f32.mrb[2].mxu0  ;;  %v882_v18 = vpop.f32.mrb[2].mxu1 }
 0x1c1   : > { %v508_v19 = vpop.f32.mrb[3].mxu0  ;;  %v528_v20 = vpop.f32.mrb[3].mxu1 }
 0x1c4   : > { %v879_v21 = vpop.f32.mrb[4].mxu0  ;;  %v885_v22 = vpop.f32.mrb[4].mxu1 }
 0x1c5   : > { %v548_v23 = vmax.f32 %v876_v17, %v879_v21  ;;  %v518_v24 = vpop.f32.mrb[5].mxu0  ;;  %v538_v25 = vpop.f32.mrb[5].mxu1 }
 0x1c6   : > { %v547_v26 = vmax.f32 %v508_v19, %v518_v24 }
 0x1c7   : > { %v550_v30 = vmax.f32 %v548_v23, %v882_v18 }
 0x1c8   : > { %v549_v31 = vmax.f32 %v547_v26, %v528_v20 }
 0x1c9   : > { %v552_v34 = vmax.f32 %v550_v30, %v885_v22 }
 0x1ca   : > { %v551_v36 = vmax.f32 %v549_v31, %v538_v25 }
 0x1cb   : > { %v554_v39 = vadd.f32 %v869_v15, %v552_v34 }
 0x1cc   : > { %v553_v40 = vadd.f32 %v551_v36, %v408_v16 }
 0x1cd   : > { %v562_v42 = vadd.f32 %v839_v35, %v554_v39 }
 0x1ce   : > { %v561_v43 = vadd.f32 %v839_v35, %v553_v40 }
 0x1cf   : > { %vm564_vm2 = vcmp.gt.f32.partialorder %v562_v42, 0.0  ;;  %v566_v45 = vmul.f32 0.2, %v562_v42 }
 0x1d0   : > { %vm563_vm3 = vcmp.gt.f32.partialorder %v561_v43, 0.0  ;;  %v565_v46 = vmul.f32 0.2, %v561_v43 }
 0x1d1   : > { %v568_v48 = vsel %vm564_vm2, %v562_v42, %v566_v45 }
 0x1d2   : > { %v625_v49 = vrot.slane %v568_v48, %v575_v44  ;;  %v567_v50 = vsel %vm563_vm3, %v561_v43, %v565_v46  ;;  %v618_v0 = vcombine.high %v568_v48, %v928_v53 }
 0x1d3   : > { %v576_v51 = vrot.slane %v567_v50, %v575_v44  ;;  %v569_v55 = vcombine.high %v567_v50, %v928_v53 }
 0x1d4   : > { %v640_v52 = vrot.slane %v625_v49, %v590_v47  ;;  %v633_v54 = vcombine.high %v625_v49, %v928_v53  ;;  %v632_v5 = vrot.slane %v618_v0, %v575_v44 }
 0x1d5   : > { %v591_v57 = vrot.slane %v576_v51, %v590_v47  ;;  %v583_v59 = vrot.slane %v569_v55, %v575_v44  ;;  %v584_v60 = vcombine.high %v576_v51, %v928_v53 }
 0x1d6   : > { %696 = vrot.lane.b32.xlu1 %v640_v52, %s929_s9  ;;  %v663_v56 = vcombine.high %v640_v52, %v928_v53  ;;  %v647_v58 = vrot.slane %v633_v54, %v590_v47  ;;  %v655_v7 = vrot.slane %v632_v5, %v590_v47  ;;  %v648_v8 = vcombine.high %v632_v5, %v928_v53 }
 0x1d7   : > { %v614_v61 = vcombine.high %v591_v57, %v928_v53  ;;  %v606_v62 = vrot.slane %v583_v59, %v590_v47  ;;  %v598_v63 = vrot.slane %v584_v60, %v590_v47  ;;  %v599_v2 = vcombine.high %v583_v59, %v928_v53 }
 0x1d8   : > { %700 = vrot.lane.b32.xlu0 %v663_v56, %s930_s10  ;;  %v664_v3 = vcombine.high %v647_v58, %v928_v53  ;;  %v662_v10 = vrot.slane %v648_v8, %v590_v47  ;;  %v665_v11 = vcombine.high %v655_v7, %v928_v53 }
 0x1d9   : > { %v615_v1 = vcombine.high %v598_v63, %v928_v53  ;;  %v613_v4 = vrot.slane %v599_v2, %v590_v47  ;;  %v616_v6 = vcombine.high %v606_v62, %v928_v53 }
 0x1da   : > { %704 = vrot.lane.b32.xlu1 %v647_v58, %s931_s11  ;;  %v666_v12 = vcombine.high %v662_v10, %v928_v53 }
 0x1db   : > { %v617_v9 = vcombine.high %v613_v4, %v928_v53 }
 0x1dc   : > { %668 = vrot.lane.b32.xlu0 %v614_v61, %s932_s12 }
 0x1de   : > { %680 = vrot.lane.b32.xlu1 %v606_v62, %s933_s13 }
 0x1e0   : > { %672 = vrot.lane.b32.xlu0 %v598_v63, %s934_s14 }
 0x1e2   : > { %676 = vrot.lane.b32.xlu1 %v615_v1, %s935_s15 }
 0x1e4   : > { %708 = vrot.lane.b32.xlu0 %v664_v3, %s936_s16 }
 0x1e6   : > { %688 = vrot.lane.b32.xlu1 %v613_v4, %s937_s17 }
 0x1e8   : > { %684 = vrot.lane.b32.xlu0 %v616_v6, %s938_s20 }
 0x1ea   : > { %712 = vrot.lane.b32.xlu1 %v655_v7, %s939_s21 }
 0x1ec   : > { %692 = vrot.lane.b32.xlu0 %v617_v9, %s940_s22 }
 0x1ee   : > { %720 = vrot.lane.b32.xlu1 %v662_v10, %s941_s23 }
 0x1f0   : > { %716 = vrot.lane.b32.xlu0 %v665_v11, %s942_s24 }
 0x1f4   : > { %724 = vrot.lane.b32.xlu0 %v666_v12, %s943_s25 }
 0x248   : > { %v697_v13 = vpop.permute.xlu1 %696 }
 0x24a   : > { %v701_v14 = vpop.permute.xlu0 %700 }
 0x24c   : > { %v705_v15 = vpop.permute.xlu1 %704 }
 0x24e   : > { %v669_v16 = vpop.permute.xlu0 %668 }
 0x24f   : > { %v728_v19 = vsel %vm727_vm4, %v591_v57, %v669_v16 }
 0x250   : > { %v681_v17 = vpop.permute.xlu1 %680 }
 0x252   : > { %v673_v18 = vpop.permute.xlu0 %672 }
 0x253   : > { %v729_v20 = vsel %vm417_vm1, %v728_v19, %v673_v18  ;;  %vm754_vm1 = vcmask 982016  }
 0x254   : > { %v677_v21 = vpop.permute.xlu1 %676 }
 0x255   : > { %v731_v23 = vsel %vm730_vm5, %v729_v20, %v677_v21 }
 0x256   : > { %v709_v22 = vpop.permute.xlu0 %708  ;;  %v733_v25 = vsel %vm732_vm6, %v731_v23, %v681_v17 }
 0x258   : > { %v689_v24 = vpop.permute.xlu1 %688 }
 0x25a   : > { %v685_v26 = vpop.permute.xlu0 %684 }
 0x25b   : > { %v735_v27 = vsel %vm734_vm7, %v733_v25, %v685_v26 }
 0x25c   : > { %v737_v28 = vsel %vm736_vm8, %v735_v27, %v689_v24  ;;  %v713_v30 = vpop.permute.xlu1 %712 }
 0x25e   : > { %v693_v29 = vpop.permute.xlu0 %692 }
 0x25f   : > { %v739_v31 = vsel %vm738_vm9, %v737_v28, %v693_v29 }
 0x260   : > { %v741_v32 = vsel %vm740_vm10, %v739_v31, %v697_v13  ;;  %v721_v38 = vpop.permute.xlu1 %720 }
 0x261   : > { %v743_v33 = vsel %vm742_vm11, %v741_v32, %v701_v14 }
 0x262   : > { %v745_v34 = vsel %vm744_vm12, %v743_v33, %v705_v15  ;;  %v717_v35 = vpop.permute.xlu0 %716 }
 0x263   : > { %v747_v36 = vsel %vm746_vm13, %v745_v34, %v709_v22 }
 0x264   : > { %v749_v37 = vsel %vm748_vm14, %v747_v36, %v713_v30 }
 0x265   : > { %v751_v39 = vsel %vm750_vm15, %v749_v37, %v717_v35 }
 0x266   : > { %v753_v40 = vsel %vm752_vm0, %v751_v39, %v721_v38  ;;  %v725_v41 = vpop.permute.xlu0 %724 }
 0x267   : > { %v755_v42 = vsel %vm754_vm1, %v753_v40, %v725_v41 }
 0x268   : > { %756 = vst [vmem:[%s240_s28] sm:$0x1] %v755_v42 }
 0x269 PF: > { %s15_s18 = sadd.s32 1, %s924_s18  }
 0x26a   : > { %p12_p4 = scmp.ge.s32.totalorder %s15_s18, 4  }
 0x26c   :  { %14 = sbr.rel (!%p12_p4) target bundleno = 1 (0x1), region = 73 }

</bundles_post_ra>
